<compile_context>
chip_gen: v7x
topology: tpu7x:2x2x1
jax: 0.10.0
libtpu: 0.0.40
codegen_flags: <defaults>
</compile_context>

<pallas_src>
import functools

import jax
import jax.numpy as jnp
from jax.experimental import pallas as pl
from jax.experimental.pallas import tpu as pltpu


def _physical_vmem_bytes():
    """Per-core VMEM capacity; conservative 64 MiB (v7x) fallback."""
    try:
        info = pltpu.get_tpu_info()
        v = getattr(info, "vmem_capacity_bytes", None)
        if v:
            return int(v)
    except Exception:
        pass
    return 64 * 1024 * 1024


def _ce_kernel(*refs, ignore_index, use_weight, n_rows):
    if use_weight:
        x_ref, tgt_ref, wrow_ref, out_ref = refs
    else:
        x_ref, tgt_ref, out_ref = refs
        wrow_ref = None

    x = x_ref[...]                              # (T, C) logits, native dtype
    tgt = tgt_ref[...]                          # (T, 1) int32 targets
    t, c = x.shape

    lane = jax.lax.broadcasted_iota(jnp.int32, (t, c), 1)
    hit = lane == tgt                           # (T, C) one-hot mask

    # Stabilized log-sum-exp: max(x) + log(sum(exp(x - max))) - x[target].
    # The f32 upcast of the block is single-use (feeds exp only).
    m = jnp.max(x, axis=1, keepdims=True).astype(jnp.float32)                # (T, 1)
    sum_exp = jnp.sum(jnp.exp(x.astype(jnp.float32) - m),
                      axis=1, keepdims=True)                                  # (T, 1)
    x_t = jnp.sum(jnp.where(hit, x, 0), axis=1,
                  keepdims=True).astype(jnp.float32)                          # (T, 1)
    nls = m + jnp.log(sum_exp) - x_t                                          # (T, 1)

    if use_weight:
        nls = wrow_ref[...] * nls               # per-row weight, gathered in wrapper

    # Mask rows of the (possibly padded) last tile.
    row = pl.program_id(0) * t + jax.lax.broadcasted_iota(jnp.int32, (t, 1), 0)
    valid = row < n_rows                                                      # (T, 1)

    loss_part = jnp.sum(jnp.where(valid, nls, 0.0))
    nb_part = jnp.sum(jnp.where(valid & (tgt != ignore_index), 1.0, 0.0))

    # Single lane-dense, fully-written per-tile output block:
    # sublane 0 carries loss_part, sublane 1 carries nb_part.
    sub = jax.lax.broadcasted_iota(jnp.int32, out_ref.shape, 1)
    out_ref[...] = jnp.where(sub == 0, loss_part, nb_part)


def handle_cross_entropy_loss(output, target, weight=None, ignore_index=-1):
    """Pallas port of Handle_Croess_Entropy_Loss(ignore_index, weight).forward."""
    n, c = output.shape
    in_itemsize = jnp.dtype(output.dtype).itemsize
    tgt2d = target.astype(jnp.int32).reshape(n, 1)
    use_weight = weight is not None

    args = [output, tgt2d]
    if use_weight:
        w = weight.astype(jnp.float32)
        if 0 <= ignore_index < c:
            # mirrors __init__: self.weight[ignore_index] = 0.0
            w = w.at[ignore_index].set(0.0)
        # Hoisted per-row weight gather (tiny [N] gather done by XLA).
        w_row = w[jnp.clip(target, 0, c - 1)].reshape(n, 1)
        args.append(w_row)

    # --- VMEM budget & tile sizing ---------------------------------------
    physical = _physical_vmem_bytes()
    vmem_limit = min(int(physical * 0.45), physical - (8 << 20))
    budget = int(vmem_limit * 0.60)

    # Per-row cost: 2x double-buffered logits block + ~2 f32 temporaries per
    # row of the block + padded (T,1)->(T,128) narrow inputs (double-buffered).
    n_narrow = 2 if use_weight else 1
    per_row = 2 * c * in_itemsize + 2 * c * 4 + n_narrow * 2 * 512

    if 8 * per_row > budget:
        # Vocab-scale C: raise the scoped limit enough for a minimum 8-row tile.
        # TODO(synk): for truly huge C, add a second "arbitrary" grid axis over
        # C with running max / sum-of-exp accumulators instead.
        vmem_limit = max(vmem_limit, min(physical - (4 << 20), 8 * per_row + (8 << 20)))
        budget = max(budget, 8 * per_row)

    tile_n = max(8, min(16384, (budget // per_row) // 8 * 8))
    if tile_n >= n:
        if n >= 16:
            # Split into >= 2 tiles so the "parallel" axis can shard across
            # both v7x TensorCores (cheap extra step on v5e/v6e).
            tile_n = ((-(-n // 2)) + 7) // 8 * 8
        else:
            tile_n = n
    grid = pl.cdiv(n, tile_n)

    in_specs = [
        pl.BlockSpec((tile_n, c), lambda i: (i, 0)),   # logits, pipelined
        pl.BlockSpec((tile_n, 1), lambda i: (i, 0)),   # targets, pipelined
    ]
    if use_weight:
        in_specs.append(pl.BlockSpec((tile_n, 1), lambda i: (i, 0)))  # weight[target]

    kernel = functools.partial(
        _ce_kernel, ignore_index=ignore_index, use_weight=use_weight, n_rows=n
    )

    cost = pl.CostEstimate(
        flops=6 * n * c,
        transcendentals=n * c + n,
        bytes_accessed=(n * c * in_itemsize + n * 4
                        + (n * 4 if use_weight else 0)
                        + grid * 8 * 128 * 4),
    )

    parts = pl.pallas_call(
        kernel,
        grid=(grid,),
        in_specs=in_specs,
        out_specs=pl.BlockSpec((1, 8, 128), lambda i: (i, 0, 0)),
        out_shape=jax.ShapeDtypeStruct((grid, 8, 128), jnp.float32),
        compiler_params=pltpu.CompilerParams(
            dimension_semantics=("parallel",),
            vmem_limit_bytes=int(vmem_limit)),
        cost_estimate=cost,
    )(*args)

    loss_sum = jnp.sum(parts[:, 0, 0])
    nb = jnp.sum(parts[:, 1, 0])
    # NOTE: nb == 0 (all targets ignored) divides by zero, matching the module.
    return loss_sum / nb


def _reference(output, target, weight, ignore_index):
    # pure-JAX mirror of the PyTorch forward() for verification
    output = output.astype(jnp.float32)
    if weight is not None and 0 <= ignore_index < output.shape[1]:
        weight = weight.at[ignore_index].set(0.0)
    ex = jnp.exp(output)
    tmp1 = jnp.take_along_axis(ex, target[:, None], axis=1)[:, 0]
    tmp2 = ex.sum(axis=1)
    nls = -jnp.log(tmp1 / tmp2)
    if weight is not None:
        nls = weight[target] * nls
    nb = jnp.sum((target != ignore_index).astype(jnp.int32))
    return nls.sum() / nb


if __name__ == "__main__":
    key = jax.random.PRNGKey(0)
    N, C = 8, 32                     # seq=8 samples, hidden/classes=32
    ignore_index = 3

    k1, k2 = jax.random.split(key)
    output = jax.random.normal(k1, (N, C), dtype=jnp.float32)
    target = jax.random.randint(k2, (N,), 0, C, dtype=jnp.int32)
    # force a couple of ignored samples
    target = target.at[1].set(ignore_index).at[5].set(ignore_index)

    # deterministic class weights (shape [C])
    weight = jnp.linspace(0.5, 1.5, C, dtype=jnp.float32)

    # weighted path (matches the module config where ignore_index != -1)
    loss = handle_cross_entropy_loss(output, target, weight=weight,
                                     ignore_index=ignore_index)
    loss = jax.block_until_ready(loss)
    ref = _reference(output, target, weight, ignore_index)
    assert jnp.allclose(loss, ref, rtol=1e-5, atol=1e-5), (loss, ref)

    # unweighted path (no per-row weight input at all)
    loss_u = handle_cross_entropy_loss(output, target, weight=None,
                                       ignore_index=-1)
    loss_u = jax.block_until_ready(loss_u)
    ref_u = _reference(output, target, None, -1)
    assert jnp.allclose(loss_u, ref_u, rtol=1e-5, atol=1e-5), (loss_u, ref_u)

    print("KERNEL_OK")
</pallas_src>

<mosaic_0001>
module attributes {stable_mosaic.version = 11 : i64} {
  func.func @_ce_kernel(%arg0: i32, %arg1: memref<8x32xf32, #tpu.memory_space<vmem>>, %arg2: memref<8x1xi32, #tpu.memory_space<vmem>>, %arg3: memref<8x1xf32, #tpu.memory_space<vmem>>, %arg4: memref<1x8x128xf32, #tpu.memory_space<vmem>>) attributes {dimension_semantics = [#tpu.dimension_semantics<parallel>], iteration_bounds = array<i64: 1>, scalar_prefetch = 0 : i64, scratch_operands = 0 : i64, tpu.core_type = #tpu.core_type<tc>, window_params = [{transform_indices = @transform_0, window_bounds = array<i64: 8, 32>}, {transform_indices = @transform_1, window_bounds = array<i64: 8, 1>}, {transform_indices = @transform_2, window_bounds = array<i64: 8, 1>}, {transform_indices = @transform_3, window_bounds = array<i64: 1, 8, 128>}]} {
    %c0 = arith.constant 0 : index
    %c0_0 = arith.constant 0 : index
    %0 = vector.load %arg1[%c0, %c0_0] : memref<8x32xf32, #tpu.memory_space<vmem>>, vector<8x32xf32>
    %c0_1 = arith.constant 0 : index
    %c0_2 = arith.constant 0 : index
    %1 = vector.load %arg2[%c0_1, %c0_2] : memref<8x1xi32, #tpu.memory_space<vmem>>, vector<8x1xi32>
    %2 = tpu.iota {dimensions = array<i32: 1>} : vector<8x32xi32>
    %3 = vector.broadcast %1 : vector<8x1xi32> to vector<8x32xi32>
    %4 = arith.cmpi eq, %2, %3 : vector<8x32xi32>
    %cst = arith.constant dense<0xFF800000> : vector<8xf32>
    %5 = vector.multi_reduction <maximumf>, %0, %cst [1] : vector<8x32xf32> to vector<8xf32>
    %6 = vector.shape_cast %5 : vector<8xf32> to vector<8x1xf32>
    %7 = vector.broadcast %6 : vector<8x1xf32> to vector<8x32xf32>
    %8 = arith.subf %0, %7 : vector<8x32xf32>
    %9 = math.exp %8 : vector<8x32xf32>
    %cst_3 = arith.constant dense<0.000000e+00> : vector<8xf32>
    %10 = vector.multi_reduction <add>, %9, %cst_3 [1] : vector<8x32xf32> to vector<8xf32>
    %11 = vector.shape_cast %10 : vector<8xf32> to vector<8x1xf32>
    %c0_i32 = arith.constant 0 : i32
    %12 = arith.sitofp %c0_i32 : i32 to f32
    %13 = vector.broadcast %12 : f32 to vector<8x32xf32>
    %14 = arith.select %4, %0, %13 : vector<8x32xi1>, vector<8x32xf32>
    %cst_4 = arith.constant dense<0.000000e+00> : vector<8xf32>
    %15 = vector.multi_reduction <add>, %14, %cst_4 [1] : vector<8x32xf32> to vector<8xf32>
    %16 = vector.shape_cast %15 : vector<8xf32> to vector<8x1xf32>
    %17 = math.log %11 : vector<8x1xf32>
    %18 = arith.addf %6, %17 : vector<8x1xf32>
    %19 = arith.subf %18, %16 : vector<8x1xf32>
    %c0_5 = arith.constant 0 : index
    %c0_6 = arith.constant 0 : index
    %20 = vector.load %arg3[%c0_5, %c0_6] : memref<8x1xf32, #tpu.memory_space<vmem>>, vector<8x1xf32>
    %21 = arith.mulf %20, %19 : vector<8x1xf32>
    %c8_i32 = arith.constant 8 : i32
    %22 = arith.muli %arg0, %c8_i32 : i32
    %23 = tpu.iota {dimensions = array<i32: 0>} : vector<8x1xi32>
    %24 = vector.broadcast %22 : i32 to vector<8x1xi32>
    %25 = arith.addi %24, %23 : vector<8x1xi32>
    %c8_i32_7 = arith.constant 8 : i32
    %26 = vector.broadcast %c8_i32_7 : i32 to vector<8x1xi32>
    %27 = arith.cmpi slt, %25, %26 : vector<8x1xi32>
    %cst_8 = arith.constant 0.000000e+00 : f32
    %28 = vector.broadcast %cst_8 : f32 to vector<8x1xf32>
    %29 = arith.select %27, %21, %28 : vector<8x1xi1>, vector<8x1xf32>
    %30 = vector.shape_cast %29 : vector<8x1xf32> to vector<1x8x1xf32>
    %cst_9 = arith.constant dense<0.000000e+00> : vector<1xf32>
    %31 = vector.multi_reduction <add>, %30, %cst_9 [1, 2] : vector<1x8x1xf32> to vector<1xf32>
    %32 = vector.shape_cast %31 : vector<1xf32> to vector<1x1x1xf32>
    %33 = vector.extract %32[0, 0, 0] : f32 from vector<1x1x1xf32>
    %c3_i32 = arith.constant 3 : i32
    %34 = vector.broadcast %c3_i32 : i32 to vector<8x1xi32>
    %35 = arith.cmpi ne, %1, %34 : vector<8x1xi32>
    %36 = arith.andi %27, %35 : vector<8x1xi1>
    %cst_10 = arith.constant 1.000000e+00 : f32
    %cst_11 = arith.constant 0.000000e+00 : f32
    %37 = vector.broadcast %cst_10 : f32 to vector<8x1xf32>
    %38 = vector.broadcast %cst_11 : f32 to vector<8x1xf32>
    %39 = arith.select %36, %37, %38 : vector<8x1xi1>, vector<8x1xf32>
    %40 = vector.shape_cast %39 : vector<8x1xf32> to vector<1x8x1xf32>
    %cst_12 = arith.constant dense<0.000000e+00> : vector<1xf32>
    %41 = vector.multi_reduction <add>, %40, %cst_12 [1, 2] : vector<1x8x1xf32> to vector<1xf32>
    %42 = vector.shape_cast %41 : vector<1xf32> to vector<1x1x1xf32>
    %43 = vector.extract %42[0, 0, 0] : f32 from vector<1x1x1xf32>
    %44 = tpu.iota {dimensions = array<i32: 1>} : vector<1x8x128xi32>
    %c0_i32_13 = arith.constant 0 : i32
    %45 = vector.broadcast %c0_i32_13 : i32 to vector<1x8x128xi32>
    %46 = arith.cmpi eq, %44, %45 : vector<1x8x128xi32>
    %47 = vector.broadcast %33 : f32 to vector<1x8x128xf32>
    %48 = vector.broadcast %43 : f32 to vector<1x8x128xf32>
    %49 = arith.select %46, %47, %48 : vector<1x8x128xi1>, vector<1x8x128xf32>
    %c0_14 = arith.constant 0 : index
    %c0_15 = arith.constant 0 : index
    %c0_16 = arith.constant 0 : index
    %50 = vector.load %arg4[%c0_14, %c0_15, %c0_16] : memref<1x8x128xf32, #tpu.memory_space<vmem>>, vector<1x8x128xf32>
    tpu.vector_store %arg4[%c0_14, %c0_15, %c0_16], %49 {strides = array<i32>} : memref<1x8x128xf32, #tpu.memory_space<vmem>>, vector<1x8x128xf32>,
    return
  }
  func.func @transform_0(%arg0: i32) -> (i32, i32) {
    %c0_i32 = arith.constant 0 : i32
    %c0_i32_0 = arith.constant 0 : i32
    return %arg0, %c0_i32 : i32, i32
  }
  func.func @transform_1(%arg0: i32) -> (i32, i32) {
    %c0_i32 = arith.constant 0 : i32
    %c0_i32_0 = arith.constant 0 : i32
    return %arg0, %c0_i32 : i32, i32
  }
  func.func @transform_2(%arg0: i32) -> (i32, i32) {
    %c0_i32 = arith.constant 0 : i32
    %c0_i32_0 = arith.constant 0 : i32
    return %arg0, %c0_i32 : i32, i32
  }
  func.func @transform_3(%arg0: i32) -> (i32, i32, i32) {
    %c0_i32 = arith.constant 0 : i32
    %c0_i32_0 = arith.constant 0 : i32
    %c0_i32_1 = arith.constant 0 : i32
    return %arg0, %c0_i32, %c0_i32_0 : i32, i32, i32
  }
}

</mosaic_0001>

<bundles_post_ra>
// kernel: tpu_custom_call.1
= control target key start
LH: loop header
LB: loop body
LE: loop exit
PB: predicated region body
PF: predicated region fallthrough
CT: control target
= control target key end

     0   :  { %vm23_vm0 = vcmask 261120   ;;  %s176_s0 = inlined_call_operand.vmem [shape: f32[8,32], index: 0, kind: input, shape index: {}]   ;;  %s177_s1 = inlined_call_operand.vmem [shape: s32[8,1], index: 1, kind: input, shape index: {}]   ;;  %s178_s2 = inlined_call_operand.vmem [shape: f32[8,1], index: 2, kind: input, shape index: {}]   ;;  %s179_s3 = inlined_call_operand.hbm [shape: f32[1,8,128], index: 3, kind: output, shape index: {}]  }
   0x1   :  { %v15_v0 = vld [vmem:[%s176_s0] sm:$0xff] }
   0x2   :  { %8 = vsyncpa [#allocation3], 0  ;;  %v24_v1 = vsel %vm23_vm0, %v15_v0, -inf  ;;  %v129_v2 = vmov 0   ;;  %v16_v3 = vld [vmem:[%s177_s1] sm:$0xff]  ;;  %v17_v7 = vlaneseq  ;;  %vm50_vm3 = vcmask 7168  }
   0x3   :  { %100 = vset.pattern.permute.xlu0 %v129_v2  ;;  %v41_v19 = vld [vmem:[%s178_s2] sm:$0xff]  ;;  %vm61_vm2 = vcmp.ne.s32.totalorder %v16_v3, 3  ;;  %v130_v22 = vmov 0.0   ;;  %s131_s16 = smov [#allocation2]  }
   0x4   :  { %25 = vmax.xlane.f32.xlu0 %v24_v1  ;;  %v18_v8 = vand.u32 127, %v17_v7  ;;  %v63_v23 = vsel %vm61_vm2, 1.0, %v130_v22  ;;  %v45_v40 = vshrl.u32 %v17_v7, 7  ;;  %s85_s17 = sshll.u32 %s131_s16, 4  ;;  %s86_s17 = int_to_ptr.vmem [resolvable:$true] %s85_s17 }
   0x5   :  { %v64_v25 = vsel %vm50_vm3, %v63_v23, 0.0  ;;  %s105_s19 = scalar_lea.vmem %s86_s17, 128  ;;  %p110_p1 = scmp.lt.s32.totalorder %s86_s17, %s86_s17 }
   0x6   :  { %vm74_vm4 = vcmp.eq.s32.totalorder %v45_v40, 0  ;;  %p106_p0 = scmp.ne.s32.totalorder %s86_s17, %s105_s19  ;;  %p111_p2 = scmp.lt.s32.totalorder %s105_s19, %s105_s19 }
   0x8   :  { %p112_p3 = por %p111_p2, %p110_p1 }
   0xa   :  { %p113_p4 = pnand %p112_p3, %p106_p0 }
  0x1a   :  { %20 = vperm.xlu0 %100, %v16_v3  }
  0x91   :  { %v26_v4 = vpop.xlane.xlu0 %25 }
  0x92   :  { %v27_v5 = vsub.f32 %v15_v0, %v26_v4 }
  0x94   :  { %v28_v6 = vmul.f32 1.442695, %v27_v5 }
  0x96   :  { %101 = vpow2.f32 %v28_v6 }
  0x99   :  { %v21_v9 = vpop.permute.xlu0 %20 }
  0x9a   :  { %vm22_vm1 = vcmp.eq.s32.totalorder %v18_v8, %v21_v9 }
  0x9b   :  { %v33_v11 = vsel %vm22_vm1, %v15_v0, 0.0 }
  0x9c   :  { %v34_v13 = vsel %vm23_vm0, %v33_v11, 0.0 }
  0xa0   :  { %v102_v10 = vpop.eup %101 }
  0xa1   :  { %v30_v12 = vsel %vm23_vm0, %v102_v10, 0.0 }
  0xa2   :  { %31 = vadd.xlane.f32.xlu1 %v30_v12 }
  0xa6   :  { %35 = vadd.xlane.f32.xlu1 %v34_v13 }
 0x12f   :  { %v32_v14 = vpop.xlane.xlu1 %31 }
 0x130   :  { %103 = vlog2.f32 %v32_v14 }
 0x133   :  { %v36_v17 = vpop.xlane.xlu1 %35 }
 0x13a   :  { %v104_v15 = vpop.eup %103 }
 0x13b   :  { %v38_v16 = vmul.f32 0.6931472, %v104_v15 }
 0x13d   :  { %v39_v18 = vadd.f32 %v38_v16, %v26_v4 }
 0x13f   :  { %v40_v20 = vsub.f32 %v39_v18, %v36_v17 }
 0x141   :  { %v42_v21 = vmul.f32 %v41_v19, %v40_v20 }
 0x143   :  { %v51_v24 = vsel %vm50_vm3, %v42_v21, 0.0 }
 0x144   :  { %52 = vadd.xlane.f32.xlu1 %v51_v24 }
 0x148   :  { %65 = vadd.xlane.f32.xlu1 %v64_v25 }
 0x1d1   :  { %v53_v26 = vpop.xlane.xlu1 %52 }
 0x1d2   :  { %v54_v27 = vrot.slane %v53_v26, 4 }
 0x1d4   :  { %v55_v28 = vadd.f32 %v54_v27, %v53_v26 }
 0x1d5   :  { %v66_v29 = vpop.xlane.xlu1 %65 }
 0x1d6   :  { %v56_v30 = vrot.slane %v55_v28, 2  ;;  %v67_v31 = vrot.slane %v66_v29, 4 }
 0x1d8   :  { %v68_v32 = vadd.f32 %v67_v31, %v66_v29  ;;  %v57_v33 = vadd.f32 %v56_v30, %v55_v28 }
 0x1da   :  { %v69_v34 = vrot.slane %v68_v32, 2  ;;  %v58_v35 = vrot.slane %v57_v33, 1 }
 0x1dc   :  { %v70_v36 = vadd.f32 %v69_v34, %v68_v32  ;;  %v59_v37 = vadd.f32 %v58_v35, %v57_v33 }
 0x1de   :  { %93 = vpush %v59_v37  ;;  %v71_v38 = vrot.slane %v70_v36, 1 }
 0x1e0   :  { %v72_v39 = vadd.f32 %v71_v38, %v70_v36 }
 0x1e2   :  { %95 = vpush %v72_v39 }
 0x20f   :  { %s94_s2 = spop %93 }
 0x210   :  { %v75_v41 = vstv %s94_s2 }
 0x213   :  { %s96_s18 = spop %95 }
 0x214   :  { %v76_v42 = vstv %s96_s18 }
 0x215   :  { %v77_v43 = vsel %vm74_vm4, %v75_v41, %v76_v42 }
 0x216   :  { %78 = vst [vmem:[#allocation2] sm:$0xff] %v77_v43 }
 0x217   :  { %116 = shalt.err (!%p113_p4)
}
 0x218   :  { %s117_s22 = scalar_lea.hbm %s179_s3, 128 }
 0x219   :  { %p118_p5 = scmp.ne.s32.totalorder %s179_s3, %s117_s22  ;;  %p121_p6 = scmp.lt.u32.totalorder %s117_s22, %s179_s3 }
 0x21b   :  { %p123_p7 = pnand %p121_p6, %p118_p5 }
 0x21d   :  { %126 = shalt.err (!%p123_p7)
}
 0x21e   :  { %88 = dma.vmem_to_hbm [thread:$0]  %s86_s17, 128, %s179_s3, [#allocation3]  }
 0x21f   :  { %127 = dma.done.wait [#allocation3], 128  }
 0x220   :  { %128 = vsyncadd [#allocation3], 4294967168 }
 0x221   :  { %92 = vsyncpa [#allocation3], 1 }

</bundles_post_ra>
